<compile_context>
chip_gen: v7x
topology: tpu7x:2x2x1
jax: 0.10.0
libtpu: 0.0.40
codegen_flags: <defaults>
</compile_context>

<pallas_src>
import functools
import math

import jax
import jax.numpy as jnp
from jax.experimental import pallas as pl
from jax.experimental.pallas import tpu as pltpu


# ------------------------------ slab layout ----------------------------------

def _round_up(n, m):
    return ((n + m - 1) // m) * m


def _slab_layout(H):
    """Row/col ranges of each packed tensor inside the (rows, 128) f32 slab."""
    r_fs = 0                                   # first-stage block (H rows)
    r_w1bd = _round_up(H, 8)                   # merged layer-1 weight (2H rows)
    r_w2 = r_w1bd + _round_up(2 * H, 8)        # padded layer-2 weight (2H rows)
    r_bias = r_w2 + _round_up(2 * H, 8)        # 3 bias rows (padded block of 8)
    rows = r_bias + 8
    layout = {
        "w1t":   (r_fs, r_fs + H, 0, H),           # fs_w1^T            (H, H)
        "w0x":   (r_fs, r_fs + H, H, H + 1),       # fs_w0^T col 0      (H, 1)
        "w0t":   (r_fs, r_fs + H, H + 1, H + 2),   # fs_w0^T col 1      (H, 1)
        "b0t":   (r_fs, r_fs + H, H + 2, H + 3),   # fs_b0^T            (H, 1)
        "b1t":   (r_fs, r_fs + H, H + 3, H + 4),   # fs_b1^T            (H, 1)
        "w2c":   (r_fs, r_fs + H, H + 4, H + 5),   # fs_w2 (column)     (H, 1)
        "w1bd":  (r_w1bd, r_w1bd + 2 * H, 0, 2 * H),       # blkdiag(e_w1,h_w1)
        "w2pad": (r_w2, r_w2 + 2 * H, 0, 128),             # blkdiag(e_w2,h_w2) zero-padded to 128 lanes
        "b0eff": (r_bias, r_bias + 1, 0, 2 * H),
        "b1c":   (r_bias + 1, r_bias + 2, 0, 2 * H),
        "b2pad": (r_bias + 2, r_bias + 3, 0, 128),
    }
    return layout, rows


# ------------------------------ Pallas kernel ---------------------------------

def _build_kernel(layout):
    def _view(ref, name):
        r0, r1, c0, c1 = layout[name]
        return ref[pl.ds(r0, r1 - r0), pl.ds(c0, c1 - c0)]

    def kernel(xt_ref, slab_ref, sel_ref, e0_ref, out_ref):
        # ---- first stage, lane-dense: M = B*N collocation points on the lane
        #      axis, hidden activations are (H, M).
        x = xt_ref[pl.ds(0, 1), :]                                   # (1, M)
        t = xt_ref[pl.ds(1, 1), :]                                   # (1, M)
        w0x = _view(slab_ref, "w0x")                                 # (H, 1)
        w0t = _view(slab_ref, "w0t")                                 # (H, 1)
        # Linear(2, H) kept in VPU broadcast form (no 2-wide MXU pass).
        h = jnp.tanh(w0x * x + w0t * t + _view(slab_ref, "b0t"))     # (H, M)
        h = jnp.tanh(jnp.dot(_view(slab_ref, "w1t"), h,
                             preferred_element_type=jnp.float32)
                     + _view(slab_ref, "b1t"))                       # (H, M)
        # Degenerate 1-row MXU matmul replaced by VPU mul + XLU sublane reduce.
        q = jnp.sum(_view(slab_ref, "w2c") * h, axis=0, keepdims=True)  # (1, M)
        # (q is point_features WITHOUT fs layer-3 bias; that scalar bias is
        #  folded into b0eff during packing — exact.)

        # ---- re-batch the lane-dense (1, M=B*N) features into (B, 2H) via a
        #      block-mask matmul against the B-times row-tiled [We0|Wh0].
        g = sel_ref[...] * q                                          # (B, M)
        hh = jnp.tanh(jnp.dot(g, e0_ref[...],
                              preferred_element_type=jnp.float32)
                      + _view(slab_ref, "b0eff"))                     # (B, 2H)

        # ---- merged E/H heads (block-diagonal layer-1 / layer-2 weights).
        hh = jnp.tanh(jnp.dot(hh, _view(slab_ref, "w1bd"),
                              preferred_element_type=jnp.float32)
                      + _view(slab_ref, "b1c"))                       # (B, 2H)
        # Lane-dense padded output: full unmasked (B, 128) store; real data in
        # columns [0, 2F), exact zeros beyond (w2pad/b2pad zero-padded).
        out_ref[...] = (jnp.dot(hh, _view(slab_ref, "w2pad"),
                                preferred_element_type=jnp.float32)
                        + _view(slab_ref, "b2pad"))                   # (B, 128)

    return kernel


# --------------------------- one-time parameter packing -----------------------

def _block_diag(a, b):
    ra, ca = a.shape
    rb, cb = b.shape
    top = jnp.concatenate([a, jnp.zeros((ra, cb), a.dtype)], axis=1)
    bot = jnp.concatenate([jnp.zeros((rb, ca), b.dtype), b], axis=1)
    return jnp.concatenate([top, bot], axis=0)


def pack_params(params, batch_size):
    """Parameter-only packing.  Call ONCE and reuse across forward calls."""
    p = params
    H = p["fs_w1"].shape[0]
    N = p["e_w0"].shape[0]
    F = p["e_w2"].shape[1]
    B = batch_size
    M = B * N
    assert 2 * H <= 128 and H + 5 <= 128, "hidden_neurons must be <= 64"
    assert 2 * F <= 128, "family_size must be <= 64"
    # The sel + tiled-e0 re-batch trick does B-fold redundant K-work; it is a
    # win only for small M.
    # TODO(synk): for M >> 128 switch to a direct lane->sublane repack of q
    # plus an untiled (B,N)@(N,2H) matmul, and add a 'parallel' grid axis so
    # v7x can use both TensorCores.
    assert M <= 1024, "packing intended for small collocation counts (M <= 1024)"

    layout, rows = _slab_layout(H)

    we0cat = jnp.concatenate([p["e_w0"], p["h_w0"]], axis=1)          # (N, 2H)
    # fold the scalar fs layer-3 bias into the second-stage layer-0 bias:
    #   pf @ W0 = q_noBias @ W0 + fs_b2 * colsum(W0)        (exact)
    b0eff = (jnp.concatenate([p["e_b0"], p["h_b0"]], axis=1)
             + p["fs_b2"] * we0cat.sum(axis=0, keepdims=True))        # (1, 2H)
    w1bd = _block_diag(p["e_w1"], p["h_w1"])                          # (2H, 2H)
    b1c = jnp.concatenate([p["e_b1"], p["h_b1"]], axis=1)             # (1, 2H)
    w2bd = _block_diag(p["e_w2"], p["h_w2"])                          # (2H, 2F)
    b2c = jnp.concatenate([p["e_b2"], p["h_b2"]], axis=1)             # (1, 2F)

    def put(slab, name, val):
        r0, r1, c0, c1 = layout[name]
        assert val.shape == (r1 - r0, c1 - c0)
        return slab.at[r0:r1, c0:c1].set(val.astype(jnp.float32))

    slab = jnp.zeros((rows, 128), jnp.float32)
    slab = put(slab, "w1t", p["fs_w1"].T)
    slab = put(slab, "w0x", p["fs_w0"].T[:, 0:1])
    slab = put(slab, "w0t", p["fs_w0"].T[:, 1:2])
    slab = put(slab, "b0t", p["fs_b0"].T)
    slab = put(slab, "b1t", p["fs_b1"].T)
    slab = put(slab, "w2c", p["fs_w2"])
    slab = put(slab, "w1bd", w1bd)
    slab = put(slab, "w2pad", jnp.pad(w2bd, ((0, 0), (0, 128 - 2 * F))))
    slab = put(slab, "b0eff", b0eff)
    slab = put(slab, "b1c", b1c)
    slab = put(slab, "b2pad", jnp.pad(b2c, ((0, 0), (0, 128 - 2 * F))))

    sel = (jnp.arange(M)[None, :] // N
           == jnp.arange(B)[:, None]).astype(jnp.float32)             # (B, M)
    e0 = jnp.tile(we0cat, (B, 1)).astype(jnp.float32)                 # (M, 2H)

    return {"slab": slab, "sel": sel, "e0": e0}


# --------------------------------- forward ------------------------------------

@functools.partial(jax.jit, static_argnames=("family_size",))
def wpinn_forward(x, t, packed, bias_E, bias_H, *, family_size):
    """Matches forward semantics: returns ((coeff_E, coeff_H), (bias_E, bias_H))."""
    B, N = x.shape
    F = family_size
    H = packed["e0"].shape[1] // 2
    assert packed["sel"].shape == (B, B * N), "packed params built for different (B, N)"
    layout, rows = _slab_layout(H)
    assert packed["slab"].shape == (rows, 128)

    # hot path: one reshape/concat of x,t + a single fused pallas_call.
    xt = jnp.concatenate([x.reshape(1, -1), t.reshape(1, -1)],
                         axis=0).astype(jnp.float32)                  # (2, M)
    vmem = pl.BlockSpec(memory_space=pltpu.MemorySpace.VMEM)
    out = pl.pallas_call(
        _build_kernel(layout),
        out_shape=jax.ShapeDtypeStruct((B, 128), jnp.float32),
        in_specs=[vmem, vmem, vmem, vmem],
        out_specs=vmem,
    )(xt, packed["slab"], packed["sel"], packed["e0"])

    coeff_E = out[:, :F]
    coeff_H = out[:, F:2 * F]
    # bias_E / bias_H are pure learnable scalars (no compute in forward).
    return (coeff_E, coeff_H), (bias_E, bias_H)


# ----------------------- deterministic parameter init -------------------------

def _xavier_uniform(key, fan_in, fan_out):
    a = math.sqrt(6.0 / (fan_in + fan_out))
    return jax.random.uniform(key, (fan_in, fan_out), jnp.float32, -a, a)


def init_wpinn_params(key, input_size, hidden_neurons, family_size):
    # num_hidden_layers1 = 2, num_hidden_layers2 = 2  => 3 Linear layers each.
    H, N, F = hidden_neurons, input_size, family_size
    ks = jax.random.split(key, 9)
    z = lambda n: jnp.zeros((1, n), jnp.float32)
    return {
        # first stage: Linear(2,H), Linear(H,H), Linear(H,1); biases = 0
        "fs_w0": _xavier_uniform(ks[0], 2, H), "fs_b0": z(H),
        "fs_w1": _xavier_uniform(ks[1], H, H), "fs_b1": z(H),
        "fs_w2": _xavier_uniform(ks[2], H, 1), "fs_b2": z(1),
        # second stage E: Linear(N,H), Linear(H,H), Linear(H,F)
        "e_w0": _xavier_uniform(ks[3], N, H), "e_b0": z(H),
        "e_w1": _xavier_uniform(ks[4], H, H), "e_b1": z(H),
        "e_w2": _xavier_uniform(ks[5], H, F), "e_b2": z(F),
        # second stage H
        "h_w0": _xavier_uniform(ks[6], N, H), "h_b0": z(H),
        "h_w1": _xavier_uniform(ks[7], H, H), "h_b1": z(H),
        "h_w2": _xavier_uniform(ks[8], H, F), "h_b2": z(F),
        # scalar learnable biases (pure parameters, no compute)
        "bias_E": jnp.float32(0.5),
        "bias_H": jnp.float32(0.5),
    }


# ----------------------------- pure-JAX reference -----------------------------

def _reference_forward(x, t, p):
    B, N = x.shape
    inp = jnp.stack([x, t], axis=-1).reshape(B * N, 2)
    h = jnp.tanh(inp @ p["fs_w0"] + p["fs_b0"])
    h = jnp.tanh(h @ p["fs_w1"] + p["fs_b1"])
    pf = (h @ p["fs_w2"] + p["fs_b2"]).reshape(B, N)
    hE = jnp.tanh(pf @ p["e_w0"] + p["e_b0"])
    hE = jnp.tanh(hE @ p["e_w1"] + p["e_b1"])
    cE = hE @ p["e_w2"] + p["e_b2"]
    hH = jnp.tanh(pf @ p["h_w0"] + p["h_b0"])
    hH = jnp.tanh(hH @ p["h_w1"] + p["h_b1"])
    cH = hH @ p["h_w2"] + p["h_b2"]
    return cE, cH


# ------------------------------------ main ------------------------------------

if __name__ == "__main__":
    # Small shapes: batch=8, input_size=16 (=> M = 128 collocation points fills
    # the lane axis exactly), hidden_neurons=32, family_size=8.
    B, INPUT_SIZE, HIDDEN, FAMILY = 8, 16, 32, 8

    key = jax.random.PRNGKey(0)
    kx, kt, kp = jax.random.split(key, 3)
    x = jax.random.uniform(kx, (B, INPUT_SIZE), jnp.float32)
    t = jax.random.uniform(kt, (B, INPUT_SIZE), jnp.float32)
    params = init_wpinn_params(kp, INPUT_SIZE, HIDDEN, FAMILY)

    # One-time parameter packing (cached; NOT on the per-call path).
    packed = pack_params(params, B)

    (coeff_E, coeff_H), (bias_E, bias_H) = wpinn_forward(
        x, t, packed, params["bias_E"], params["bias_H"], family_size=FAMILY)
    jax.block_until_ready((coeff_E, coeff_H, bias_E, bias_H))

    # sanity check against a pure-JAX reference
    ref_E, ref_H = _reference_forward(x, t, params)
    assert coeff_E.shape == (B, FAMILY) and coeff_H.shape == (B, FAMILY)
    assert jnp.allclose(coeff_E, ref_E, atol=1e-5, rtol=1e-5)
    assert jnp.allclose(coeff_H, ref_H, atol=1e-5, rtol=1e-5)
    assert float(bias_E) == 0.5 and float(bias_H) == 0.5

    print("KERNEL_OK")
</pallas_src>

<mosaic_0001>
module attributes {stable_mosaic.version = 11 : i64} {
  func.func @kernel(%arg0: memref<2x128xf32, #tpu.memory_space<vmem>>, %arg1: memref<168x128xf32, #tpu.memory_space<vmem>>, %arg2: memref<8x128xf32, #tpu.memory_space<vmem>>, %arg3: memref<128x64xf32, #tpu.memory_space<vmem>>, %arg4: memref<8x128xf32, #tpu.memory_space<vmem>>) attributes {dimension_semantics = [], scalar_prefetch = 0 : i64, scratch_operands = 0 : i64, tpu.core_type = #tpu.core_type<tc>} {
    %c0 = arith.constant 0 : index
    %c0_0 = arith.constant 0 : index
    %0 = vector.load %arg0[%c0, %c0_0] : memref<2x128xf32, #tpu.memory_space<vmem>>, vector<1x128xf32>
    %c1 = arith.constant 1 : index
    %c0_1 = arith.constant 0 : index
    %1 = vector.load %arg0[%c1, %c0_1] : memref<2x128xf32, #tpu.memory_space<vmem>>, vector<1x128xf32>
    %c0_2 = arith.constant 0 : index
    %c32 = arith.constant 32 : index
    %2 = vector.load %arg1[%c0_2, %c32] : memref<168x128xf32, #tpu.memory_space<vmem>>, vector<32x1xf32>
    %c0_3 = arith.constant 0 : index
    %c33 = arith.constant 33 : index
    %3 = vector.load %arg1[%c0_3, %c33] : memref<168x128xf32, #tpu.memory_space<vmem>>, vector<32x1xf32>
    %4 = vector.broadcast %2 : vector<32x1xf32> to vector<32x128xf32>
    %5 = vector.broadcast %0 : vector<1x128xf32> to vector<32x128xf32>
    %6 = arith.mulf %4, %5 : vector<32x128xf32>
    %7 = vector.broadcast %3 : vector<32x1xf32> to vector<32x128xf32>
    %8 = vector.broadcast %1 : vector<1x128xf32> to vector<32x128xf32>
    %9 = arith.mulf %7, %8 : vector<32x128xf32>
    %10 = arith.addf %6, %9 : vector<32x128xf32>
    %c0_4 = arith.constant 0 : index
    %c34 = arith.constant 34 : index
    %11 = vector.load %arg1[%c0_4, %c34] : memref<168x128xf32, #tpu.memory_space<vmem>>, vector<32x1xf32>
    %12 = vector.broadcast %11 : vector<32x1xf32> to vector<32x128xf32>
    %13 = arith.addf %10, %12 : vector<32x128xf32>
    %14 = math.tanh %13 : vector<32x128xf32>
    %c0_5 = arith.constant 0 : index
    %c0_6 = arith.constant 0 : index
    %15 = vector.load %arg1[%c0_5, %c0_6] : memref<168x128xf32, #tpu.memory_space<vmem>>, vector<32x32xf32>
    %cst = arith.constant dense<0.000000e+00> : vector<32x128xf32>
    %16 = tpu.matmul %15, %14, %cst {dimension_numbers = #tpu.dot_dimension_numbers<[1], [0], [0], [1], [0, 0, 1, 1], [], []>} : vector<32x32xf32>, vector<32x128xf32>, vector<32x128xf32> -> vector<32x128xf32>
    %c0_7 = arith.constant 0 : index
    %c35 = arith.constant 35 : index
    %17 = vector.load %arg1[%c0_7, %c35] : memref<168x128xf32, #tpu.memory_space<vmem>>, vector<32x1xf32>
    %18 = vector.broadcast %17 : vector<32x1xf32> to vector<32x128xf32>
    %19 = arith.addf %16, %18 : vector<32x128xf32>
    %20 = math.tanh %19 : vector<32x128xf32>
    %c0_8 = arith.constant 0 : index
    %c36 = arith.constant 36 : index
    %21 = vector.load %arg1[%c0_8, %c36] : memref<168x128xf32, #tpu.memory_space<vmem>>, vector<32x1xf32>
    %22 = vector.broadcast %21 : vector<32x1xf32> to vector<32x128xf32>
    %23 = arith.mulf %22, %20 : vector<32x128xf32>
    %cst_9 = arith.constant dense<0.000000e+00> : vector<128xf32>
    %24 = vector.multi_reduction <add>, %23, %cst_9 [0] : vector<32x128xf32> to vector<128xf32>
    %25 = vector.shape_cast %24 : vector<128xf32> to vector<1x128xf32>
    %c0_10 = arith.constant 0 : index
    %c0_11 = arith.constant 0 : index
    %26 = vector.load %arg2[%c0_10, %c0_11] : memref<8x128xf32, #tpu.memory_space<vmem>>, vector<8x128xf32>
    %27 = vector.broadcast %25 : vector<1x128xf32> to vector<8x128xf32>
    %28 = arith.mulf %26, %27 : vector<8x128xf32>
    %c0_12 = arith.constant 0 : index
    %c0_13 = arith.constant 0 : index
    %29 = vector.load %arg3[%c0_12, %c0_13] : memref<128x64xf32, #tpu.memory_space<vmem>>, vector<128x64xf32>
    %cst_14 = arith.constant dense<0.000000e+00> : vector<8x64xf32>
    %30 = tpu.matmul %28, %29, %cst_14 {dimension_numbers = #tpu.dot_dimension_numbers<[1], [0], [0], [1], [0, 0, 1, 1], [], []>} : vector<8x128xf32>, vector<128x64xf32>, vector<8x64xf32> -> vector<8x64xf32>
    %c160 = arith.constant 160 : index
    %c0_15 = arith.constant 0 : index
    %31 = vector.load %arg1[%c160, %c0_15] : memref<168x128xf32, #tpu.memory_space<vmem>>, vector<1x64xf32>
    %32 = vector.broadcast %31 : vector<1x64xf32> to vector<8x64xf32>
    %33 = arith.addf %30, %32 : vector<8x64xf32>
    %34 = math.tanh %33 : vector<8x64xf32>
    %c32_16 = arith.constant 32 : index
    %c0_17 = arith.constant 0 : index
    %35 = vector.load %arg1[%c32_16, %c0_17] : memref<168x128xf32, #tpu.memory_space<vmem>>, vector<64x64xf32>
    %cst_18 = arith.constant dense<0.000000e+00> : vector<8x64xf32>
    %36 = tpu.matmul %34, %35, %cst_18 {dimension_numbers = #tpu.dot_dimension_numbers<[1], [0], [0], [1], [0, 0, 1, 1], [], []>} : vector<8x64xf32>, vector<64x64xf32>, vector<8x64xf32> -> vector<8x64xf32>
    %c161 = arith.constant 161 : index
    %c0_19 = arith.constant 0 : index
    %37 = vector.load %arg1[%c161, %c0_19] : memref<168x128xf32, #tpu.memory_space<vmem>>, vector<1x64xf32>
    %38 = vector.broadcast %37 : vector<1x64xf32> to vector<8x64xf32>
    %39 = arith.addf %36, %38 : vector<8x64xf32>
    %40 = math.tanh %39 : vector<8x64xf32>
    %c96 = arith.constant 96 : index
    %c0_20 = arith.constant 0 : index
    %41 = vector.load %arg1[%c96, %c0_20] : memref<168x128xf32, #tpu.memory_space<vmem>>, vector<64x128xf32>
    %cst_21 = arith.constant dense<0.000000e+00> : vector<8x128xf32>
    %42 = tpu.matmul %40, %41, %cst_21 {dimension_numbers = #tpu.dot_dimension_numbers<[1], [0], [0], [1], [0, 0, 1, 1], [], []>} : vector<8x64xf32>, vector<64x128xf32>, vector<8x128xf32> -> vector<8x128xf32>
    %c162 = arith.constant 162 : index
    %c0_22 = arith.constant 0 : index
    %43 = vector.load %arg1[%c162, %c0_22] : memref<168x128xf32, #tpu.memory_space<vmem>>, vector<1x128xf32>
    %44 = vector.broadcast %43 : vector<1x128xf32> to vector<8x128xf32>
    %45 = arith.addf %42, %44 : vector<8x128xf32>
    %c0_23 = arith.constant 0 : index
    %c0_24 = arith.constant 0 : index
    %46 = vector.load %arg4[%c0_23, %c0_24] : memref<8x128xf32, #tpu.memory_space<vmem>>, vector<8x128xf32>
    tpu.vector_store %arg4[%c0_23, %c0_24], %45 {strides = array<i32>} : memref<8x128xf32, #tpu.memory_space<vmem>>, vector<8x128xf32>,
    return
  }
}

</mosaic_0001>

<bundles_post_ra>
// kernel: wpinn_forward.1
= control target key start
LH: loop header
LB: loop body
LE: loop exit
PB: predicated region body
PF: predicated region fallthrough
CT: control target
= control target key end

     0   :  { %v755_v0 = vmov 33   ;;  %v756_v1 = vmov 32   ;;  %v757_v6 = vmov 34   ;;  %vm119_vm0 = vcmask 261120   ;;  %s969_s1 = inlined_call_operand.vmem [shape: f32[168,128], index: 1, kind: input, shape index: {}]   ;;  %s970_s0 = inlined_call_operand.vmem [shape: f32[2,128], index: 0, kind: input, shape index: {}]   ;;  %s971_s3 = inlined_call_operand.vmem [shape: f32[128,64], index: 3, kind: input, shape index: {}]   ;;  %s972_s2 = inlined_call_operand.vmem [shape: f32[8,128], index: 2, kind: input, shape index: {}]   ;;  %s973_s4 = inlined_call_operand.vmem [shape: f32[8,128], index: 4, kind: output, shape index: {}]  }
   0x1   :  { %725 = vset.pattern.permute.xlu1 %v755_v0  ;;  %724 = vset.pattern.permute.xlu0 %v756_v1  ;;  %v19_v2 = vld [vmem:[%s969_s1] sm:$0xff]  ;;  %v794_v3 = vld [vmem:[%s969_s1 + $0x8] sm:$0xff]  ;;  %v801_v4 = vld [vmem:[%s969_s1 + $0x10] sm:$0xff]  ;;  %v758_v7 = vmov 35   ;;  %v759_v8 = vmov 36   ;;  %v760_v48 = vmov 0.0|0.0  }
   0x2   :  { %52 = vperm.xlu1 %725, %v19_v2   ;;  %25 = vperm.xlu0 %724, %v19_v2   ;;  %v806_v5 = vld [vmem:[%s969_s1 + $0x18] sm:$0xff]  ;;  %v520_v15 = vld [vmem:[%s970_s0 + $0x1] ss:$0 sm:$0xff]  ;;  %v519_v16 = vld [vmem:[%s970_s0] ss:$0 sm:$0xff]  ;;  %vm761_vm1 = vmmov 0  }
   0x3   :  { %581 = vmatprep.mubr.msk.f32.mxu0 %vm119_vm0, %v19_v2  ;;  %v248_v45 = vld [vmem:[%s971_s3] sm:$0xff]  ;;  %v249_v46 = vld [vmem:[%s971_s3 + $0x8] sm:$0xff]  ;;  %668 = vmatprep.subr.bf16.mxu1 %v760_v48  ;;  %v250_v49 = vld [vmem:[%s971_s3 + $0x10] sm:$0xff]  ;;  %vm353_vm2 = vcmask 523264  }
   0x4   :  { %v669_v47 = vpack.c.bf16 %v249_v46, %v248_v45  ;;  %v251_v50 = vld [vmem:[%s971_s3 + $0x18] sm:$0xff]  ;;  %v252_v52 = vld [vmem:[%s971_s3 + $0x20] sm:$0xff]  ;;  %v253_v53 = vld [vmem:[%s971_s3 + $0x28] sm:$0xff] }
   0x5   :  { %v672_v51 = vpack.c.bf16 %v251_v50, %v250_v49  ;;  %v675_v54 = vpack.c.bf16 %v253_v53, %v252_v52  ;;  %v254_v55 = vld [vmem:[%s971_s3 + $0x30] sm:$0xff]  ;;  %v255_v56 = vld [vmem:[%s971_s3 + $0x38] sm:$0xff]  ;;  %v256_v58 = vld [vmem:[%s971_s3 + $0x40] sm:$0xff] }
   0x6   :  { %56 = vperm.xlu1 %725, %v794_v3   ;;  %30 = vperm.xlu0 %724, %v794_v3   ;;  %v678_v57 = vpack.c.bf16 %v255_v56, %v254_v55  ;;  %v257_v59 = vld [vmem:[%s971_s3 + $0x48] sm:$0xff]  ;;  %v258_v61 = vld [vmem:[%s971_s3 + $0x50] sm:$0xff]  ;;  %v259_v62 = vld [vmem:[%s971_s3 + $0x58] sm:$0xff] }
   0x7   :  { %670 = vmatpush3.bf16.msra.mxu1 %v669_v47  ;;  %v681_v60 = vpack.c.bf16 %v257_v59, %v256_v58  ;;  %v684_v63 = vpack.c.bf16 %v259_v62, %v258_v61  ;;  %v342_v45 = vld [vmem:[%s969_s1 + $0x30] sm:$0xff]  ;;  %v343_v46 = vld [vmem:[%s969_s1 + $0x38] sm:$0xff]  ;;  %v344_v49 = vld [vmem:[%s969_s1 + $0x40] sm:$0xff] }
   0x8   :  { %671 = vmatprep.subr.bf16.mxu1 %v760_v48  ;;  %v696_v47 = vpack.c.bf16 %v343_v46, %v342_v45  ;;  %v345_v50 = vld [vmem:[%s969_s1 + $0x48] sm:$0xff]  ;;  %v346_v52 = vld [vmem:[%s969_s1 + $0x50] sm:$0xff]  ;;  %v347_v53 = vld [vmem:[%s969_s1 + $0x58] sm:$0xff] }
   0x9   :  { %v525_v55 = vld [vmem:[%s969_s1 + $0xa0] ss:$0 sm:$0xff] }
   0xa   :  { %726 = vset.pattern.permute.xlu1 %v756_v1  ;;  %35 = vperm.xlu0 %724, %v801_v4   ;;  %v261_v1 = vld [vmem:[%s971_s3 + $0x68] sm:$0xff]  ;;  %v428_v59 = vld [vmem:[%s969_s1 + $0x60] sm:$0xff] }
   0xb   :  { %40 = vperm.xlu1 %726, %v806_v5   ;;  %673 = vmatpush3.bf16.msra.mxu1 %v672_v51  ;;  %v699_v51 = vpack.c.bf16 %v345_v50, %v344_v49 }
   0xc   :  { %674 = vmatprep.subr.bf16.mxu1 %v760_v48 }
   0xe   :  { %727 = vset.pattern.permute.xlu0 %v755_v0 }
   0xf   :  { %728 = vset.pattern.permute.xlu1 %v755_v0  ;;  %60 = vperm.xlu0 %727, %v801_v4   ;;  %v260_v0 = vld [vmem:[%s971_s3 + $0x60] sm:$0xff] }
  0x10   :  { %64 = vperm.xlu1 %728, %v806_v5   ;;  %676 = vmatpush3.bf16.msra.mxu1 %v675_v54  ;;  %v702_v54 = vpack.c.bf16 %v347_v53, %v346_v52 }
  0x11   :  { %677 = vmatprep.subr.bf16.mxu1 %v760_v48 }
  0x13   :  { %730 = vset.pattern.permute.xlu0 %v757_v6 }
  0x14   :  { %729 = vset.pattern.permute.xlu1 %v757_v6  ;;  %84 = vperm.xlu0 %730, %v794_v3  }
  0x15   :  { %80 = vperm.xlu1 %729, %v19_v2   ;;  %679 = vmatpush3.bf16.msra.mxu1 %v678_v57 }
  0x16   :  { %680 = vmatprep.subr.bf16.mxu1 %v760_v48 }
  0x18   :  { %731 = vset.pattern.permute.xlu0 %v758_v7 }
  0x19   :  { %88 = vperm.xlu1 %729, %v801_v4   ;;  %104 = vperm.xlu0 %731, %v19_v2  }
  0x1a   :  { %682 = vmatpush3.bf16.msra.mxu1 %v681_v60  ;;  %v429_v60 = vld [vmem:[%s969_s1 + $0x68] sm:$0xff] }
  0x1b   :  { %683 = vmatprep.subr.bf16.mxu1 %v760_v48  ;;  %v705_v61 = vpack.c.bf16 %v429_v60, %v428_v59 }
  0x1d   :  { %92 = vperm.xlu1 %729, %v806_v5   ;;  %116 = vperm.xlu0 %731, %v806_v5  }
  0x1e   :  { %685 = vmatpush3.bf16.msra.mxu1 %v684_v63  ;;  %v430_v63 = vld [vmem:[%s969_s1 + $0x70] sm:$0xff] }
  0x1f   :  { %686 = vmatprep.subr.bf16.mxu1 %v760_v48 }
  0x21   :  { %732 = vset.pattern.permute.xlu1 %v758_v7  ;;  %734 = vset.pattern.permute.xlu0 %v759_v8  ;;  %v340_v7 = vld [vmem:[%s969_s1 + $0x20] sm:$0xff] }
  0x22   :  { %108 = vperm.xlu1 %732, %v794_v3   ;;  %222 = vperm.xlu0 %734, %v794_v3  }
  0x26   :  { %112 = vperm.xlu1 %732, %v801_v4  }
  0x2a   :  { %733 = vset.pattern.permute.xlu1 %v759_v8  ;;  %v341_v8 = vld [vmem:[%s969_s1 + $0x28] sm:$0xff] }
  0x2b   :  { %218 = vperm.xlu1 %733, %v19_v2   ;;  %v687_v2 = vpack.c.bf16 %v261_v1, %v260_v0  ;;  %v431_v0 = vld [vmem:[%s969_s1 + $0x78] sm:$0xff] }
  0x2c   :  { %v708_v1 = vpack.c.bf16 %v431_v0, %v430_v63 }
  0x2d   :  { %688 = vmatpush3.bf16.msra.mxu1 %v687_v2  ;;  %v432_v2 = vld [vmem:[%s969_s1 + $0x80] sm:$0xff] }
  0x2e   :  { %689 = vmatprep.subr.bf16.mxu1 %v760_v48 }
  0x2f   :  { %226 = vperm.xlu1 %733, %v801_v4  }
  0x33   :  { %230 = vperm.xlu1 %733, %v806_v5  }
  0x81   :  { %v53_v9 = vpop.permute.xlu1 %52  ;;  %v26_v10 = vpop.permute.xlu0 %25 }
  0x82   :  { %v71_v20 = vmul.f32 %v520_v15, %v53_v9  ;;  %v47_v21 = vmul.f32 %v519_v16, %v26_v10  ;;  %v693_v9 = vpack.c.bf16 %v341_v8, %v340_v7  ;;  %v526_v8 = vld [vmem:[%s969_s1 + $0xa1] ss:$0 sm:$0xff] }
  0x84   :  { %v75_v25 = vadd.f32 %v71_v20, %v47_v21 }
  0x85   :  { %v57_v11 = vpop.permute.xlu1 %56  ;;  %v31_v12 = vpop.permute.xlu0 %30 }
  0x86   :  { %v72_v17 = vmul.f32 %v520_v15, %v57_v11  ;;  %v48_v18 = vmul.f32 %v519_v16, %v31_v12 }
  0x88   :  { %v76_v23 = vadd.f32 %v72_v17, %v48_v18 }
  0x89   :  { %v36_v13 = vpop.permute.xlu0 %35 }
  0x8a   :  { %v41_v14 = vpop.permute.xlu1 %40  ;;  %v49_v30 = vmul.f32 %v519_v16, %v36_v13 }
  0x8b   :  { %v50_v34 = vmul.f32 %v519_v16, %v41_v14 }
  0x8e   :  { %v61_v19 = vpop.permute.xlu0 %60 }
  0x8f   :  { %v65_v22 = vpop.permute.xlu1 %64  ;;  %v73_v26 = vmul.f32 %v520_v15, %v61_v19 }
  0x90   :  { %v74_v31 = vmul.f32 %v520_v15, %v65_v22 }
  0x91   :  { %v77_v33 = vadd.f32 %v73_v26, %v49_v30 }
  0x92   :  { %v78_v36 = vadd.f32 %v74_v31, %v50_v34 }
  0x93   :  { %v85_v24 = vpop.permute.xlu0 %84 }
  0x94   :  { %v96_v27 = vadd.f32 %v85_v24, %v76_v23  ;;  %v81_v28 = vpop.permute.xlu1 %80 }
  0x95   :  { %v95_v29 = vadd.f32 %v81_v28, %v75_v25 }
  0x96   :  { %735 = vtanh.f32 %v96_v27 }
  0x97   :  { %737 = vtanh.f32 %v95_v29 }
  0x98   :  { %v89_v32 = vpop.permute.xlu1 %88  ;;  %v105_v11 = vpop.permute.xlu0 %104 }
  0x99   :  { %v97_v35 = vadd.f32 %v89_v32, %v77_v33 }
  0x9b   :  { %739 = vtanh.f32 %v97_v35 }
  0x9c   :  { %v93_v37 = vpop.permute.xlu1 %92  ;;  %v117_v17 = vpop.permute.xlu0 %116 }
  0x9d   :  { %v98_v38 = vadd.f32 %v93_v37, %v78_v36 }
  0x9f   :  { %741 = vtanh.f32 %v98_v38 }
  0xa0   :  { %v736_v39 = vpop.eup %735 }
  0xa1   :  { %v738_v40 = vpop.eup %737  ;;  %v109_v10 = vpop.permute.xlu1 %108 }
  0xa2   :  { %v660_v41 = vpack.c.bf16 %v736_v39, %v738_v40  ;;  %v223_v23 = vpop.permute.xlu0 %222 }
  0xa4   :  { %661 = vmatprep.subr.bf16.mxu0 %v660_v41 }
  0xa5   :  { %663 = vmatpush3.bf16.msra.mxu0 %v660_v41  ;;  %v740_v42 = vpop.eup %739  ;;  %v113_v15 = vpop.permute.xlu1 %112 }
  0xa9   :  { %v742_v43 = vpop.eup %741 }
  0xaa   :  { %v664_v44 = vpack.c.bf16 %v742_v43, %v740_v42  ;;  %v219_v22 = vpop.permute.xlu1 %218  ;;  %v246_v42 = vld [vmem:[%s972_s2] sm:$0xff] }
  0xac   :  { %665 = vmatprep.subr.bf16.mxu0 %v664_v44 }
  0xad   :  { %667 = vmatpush3.bf16.msra.mxu0 %v664_v44 }
  0xae   :  { %692 = vmatprep.subr.bf16.mxu0 %v760_v48  ;;  %v227_v26 = vpop.permute.xlu1 %226 }
  0xb0   :  { %582 = vmatmul.mubr.msk.f32.vlgmr.msra.gmra.mrb[0].mxu0 %vm119_vm0, %v794_v3  ;;  %v762_v3 = vmov 0.0  }
  0xb1   :  { %584 = vmatprep.mubr.msk.f32.mxu0 %vm119_vm0, %v801_v4  ;;  %619 = vmatprep.mubr.msk.f32.mxu1 %vm761_vm1, %v762_v3  ;;  %v262_v4 = vld [vmem:[%s971_s3 + $0x70] sm:$0xff] }
  0xb2   :  { %694 = vmatpush3.bf16.msra.mxu0 %v693_v9  ;;  %v231_v33 = vpop.permute.xlu1 %230 }
  0xb3   :  { %695 = vmatprep.subr.bf16.mxu0 %v760_v48 }
  0xb4   :  { %585 = vmatmul.mubr.msk.f32.gmra.mrb[2].mxu0 %vm119_vm0, %v806_v5  ;;  %v263_v5 = vld [vmem:[%s971_s3 + $0x78] sm:$0xff] }
  0xb5   :  { %638 = vmatprep.mubr.msk.f32.mxu0 %vm761_vm1, %v762_v3  ;;  %v690_v6 = vpack.c.bf16 %v263_v5, %v262_v4  ;;  %v434_v5 = vld [vmem:[%s969_s1 + $0x90] sm:$0xff] }
  0xb6   :  { %697 = vmatpush3.bf16.msra.mxu0 %v696_v47 }
  0xb7   :  { %691 = vmatpush3.bf16.msra.mxu1 %v690_v6  ;;  %698 = vmatprep.subr.bf16.mxu0 %v760_v48  ;;  %v435_v6 = vld [vmem:[%s969_s1 + $0x98] sm:$0xff] }
  0xb8   :  { %v714_v7 = vpack.c.bf16 %v435_v6, %v434_v5 }
  0xba   :  { %700 = vmatpush3.bf16.msra.mxu0 %v699_v51 }
  0xbb   :  { %701 = vmatprep.subr.bf16.mxu0 %v760_v48 }
  0xbe   :  { %703 = vmatpush3.bf16.msra.mxu0 %v702_v54 }
  0xbf   :  { %704 = vmatprep.subr.bf16.mxu0 %v760_v48 }
 0x183   :  { %v583_v12 = vpop.f32.mrb[0].mxu0 }
 0x184   :  { %v200_v13 = vadd.f32 %v583_v12, %v109_v10  ;;  %v194_v14 = vpop.f32.mrb[1].mxu0 }
 0x185   :  { %v195_v16 = vadd.f32 %v194_v14, %v105_v11 }
 0x186   :  { %743 = vtanh.f32 %v200_v13  ;;  %v528_v13 = vld [vmem:[%s969_s1 + $0xa2] ss:$0 sm:$0xff] }
 0x187   :  { %745 = vtanh.f32 %v195_v16  ;;  %v586_v18 = vpop.f32.mrb[2].mxu0 }
 0x188   :  { %v210_v19 = vadd.f32 %v586_v18, %v117_v17  ;;  %v204_v20 = vpop.f32.mrb[3].mxu0 }
 0x189   :  { %v205_v21 = vadd.f32 %v204_v20, %v113_v15 }
 0x18a   :  { %747 = vtanh.f32 %v210_v19 }
 0x18b   :  { %749 = vtanh.f32 %v205_v21 }
 0x190   :  { %v744_v24 = vpop.eup %743 }
 0x191   :  { %v746_v25 = vpop.eup %745  ;;  %v234_v27 = vmul.f32 %v744_v24, %v223_v23 }
 0x192   :  { %v233_v28 = vmul.f32 %v746_v25, %v219_v22 }
 0x194   :  { %v748_v29 = vpop.eup %747  ;;  %v237_v30 = vadd.f32 %v234_v27, %v233_v28 }
 0x195   :  { %v750_v31 = vpop.eup %749  ;;  %v236_v34 = vmul.f32 %v748_v29, %v231_v33 }
 0x196   :  { %v235_v32 = vmul.f32 %v750_v31, %v227_v26 }
 0x198   :  { %v238_v35 = vadd.f32 %v237_v30, %v235_v32 }
 0x19a   :  { %v239_v36 = vadd.f32 %v238_v35, %v236_v34 }
 0x19c   :  { %v240_v37 = vrot.slane %v239_v36, 4 }
 0x19e   :  { %v241_v38 = vadd.f32 %v240_v37, %v239_v36 }
 0x1a0   :  { %v242_v39 = vrot.slane %v241_v38, 2 }
 0x1a2   :  { %v243_v40 = vadd.f32 %v242_v39, %v241_v38 }
 0x1a4   :  { %v244_v41 = vrot.slane %v243_v40, 1 }
 0x1a6   :  { %v245_v43 = vadd.f32 %v244_v41, %v243_v40 }
 0x1a8   :  { %v247_v44 = vmul.f32 %v246_v42, %v245_v43 }
 0x1aa   :  { %620 = vmatmul.mubr.f32.vlgmr.msra.gmra.mrb[0].mxu1 %v247_v44 }
 0x27d   :  { %v335_v56 = vpop.f32.mrb[0].mxu1 }
 0x27e   :  { %v336_v57 = vadd.f32 %v525_v55, %v335_v56  ;;  %v621_v58 = vpop.f32.mrb[1].mxu1 }
 0x280   :  { %751 = vtanh.f32 %v336_v57 }
 0x28a   :  { %v752_v62 = vpop.eup %751 }
 0x28b   :  { %639 = vmatmul.mubr.msk.f32.vlgmr.msra.gmra.mrb[4].mxu0 %vm353_vm2, %v752_v62 }
 0x28c   :  { %706 = vmatpush3.bf16.msra.mxu0 %v705_v61  ;;  %657 = vmatprep.mubr.msk.f32.mxu0 %vm761_vm1, %v762_v3  ;;  %v433_v3 = vld [vmem:[%s969_s1 + $0x88] sm:$0xff] }
 0x28d   :  { %707 = vmatprep.subr.bf16.mxu0 %v760_v48  ;;  %v711_v4 = vpack.c.bf16 %v433_v3, %v432_v2 }
 0x290   :  { %709 = vmatpush3.bf16.msra.mxu0 %v708_v1 }
 0x291   :  { %710 = vmatprep.subr.bf16.mxu0 %v760_v48 }
 0x294   :  { %712 = vmatpush3.bf16.msra.mxu0 %v711_v4 }
 0x295   :  { %713 = vmatprep.subr.bf16.mxu0 %v760_v48 }
 0x298   :  { %715 = vmatpush3.bf16.msra.mxu0 %v714_v7 }
 0x35e   :  { %v423_v9 = vpop.f32.mrb[4].mxu0 }
 0x35f   :  { %v424_v10 = vadd.f32 %v526_v8, %v423_v9  ;;  %v640_v11 = vpop.f32.mrb[5].mxu0 }
 0x361   :  { %753 = vtanh.f32 %v424_v10 }
 0x36b   :  { %v754_v12 = vpop.eup %753 }
 0x36c   :  { %658 = vmatmul.mubr.msk.f32.vlgmr.msra.gmra.mrb[6].mxu0 %vm353_vm2, %v754_v12 }
 0x43f   :  { %v510_v14 = vpop.f32.mrb[6].mxu0 }
 0x440   :  { %v511_v15 = vadd.f32 %v528_v13, %v510_v14  ;;  %v659_v16 = vpop.f32.mrb[7].mxu0 }
 0x442   :  { %514 = vst [vmem:[%s973_s4] sm:$0xff] %v511_v15 }

</bundles_post_ra>
